<compile_context>
chip_gen: v5e
topology: v5e:2x2
jax: 0.10.0
libtpu: 0.0.40
codegen_flags: <defaults>
</compile_context>

<pallas_src>
import functools

import jax
import jax.numpy as jnp
from jax.experimental import pallas as pl
from jax.experimental.pallas import tpu as pltpu


def _round_up(x, m):
    return ((x + m - 1) // m) * m


def _vmem_limit_bytes():
    """Generation-aware scoped-VMEM limit (48 MiB on 64-MiB parts, 96 MiB on 128-MiB parts)."""
    cap = 64 * 1024 * 1024  # conservative fallback (v7x per-TC capacity)
    try:
        info = pltpu.get_tpu_info()
        cap = int(getattr(info, "vmem_capacity_bytes", cap)) or cap
    except Exception:
        pass
    return min((cap * 3) // 4, 96 * 1024 * 1024)


def _choose_block_batch(B, Sp, Hp, A, itemsize, vmem_limit):
    """Batch elements per grid step: fit double-buffered blocks + scratch in VMEM,
    move >= ~1 MiB of input per step, aim for >= 8 (even) grid steps when B allows."""
    a_pad = _round_up(A, 8)
    x_b = Sp * Hp * itemsize
    # x2: BlockSpec double-buffers each pipelined block; plus resident f32 logits scratch.
    per_b = 2 * (x_b + a_pad * Hp * itemsize + a_pad * Sp * itemsize) + a_pad * Sp * 4
    fixed = 2 * (a_pad * Hp + a_pad * 128) * itemsize  # weight + bias blocks
    budget = (vmem_limit * 4) // 5 - fixed             # ~20% headroom for compiler scratch
    max_bb = max(1, min(B, budget // per_b))
    # Floor: amortize the ~0.35 us fixed per-step cost.
    min_bb = max(1, min(max_bb, pl.cdiv(1 << 20, x_b)))
    # Target >= 8 steps (>= 4 per TensorCore on dual-core parts).
    bb = max(min_bb, min(max_bb, pl.cdiv(B, 8)))
    steps = pl.cdiv(B, bb)
    if steps > 1 and steps % 2 == 1:
        for cand in range(bb - 1, max(min_bb - 1, 0), -1):
            if pl.cdiv(B, cand) % 2 == 0:
                bb = cand
                break
    return bb


def _multi_attention_kernel(x_ref, w_ref, b_ref, out_ref, atten_ref, logits_ref,
                            *, s_valid, chunk):
    """One grid step:
       x_ref      : (Bb, Sp, Hp) inputs tile (S/H zero-padded to 128 multiples)
       w_ref      : (A, Hp)      linear weight
       b_ref      : (A, 1)       linear bias (column vector, f32)
       out_ref    : (Bb, A, Hp)  softmax(atten) @ inputs
       atten_ref  : (Bb, A, Sp)  pre-softmax logits (transposed layout, as PyTorch returns)
       logits_ref : (Bb, A, Sp)  f32 VMEM scratch holding the fused phase-1 logits
    """
    Bb, Sp, Hp = x_ref.shape
    A = w_ref.shape[0]

    w = w_ref[...]                               # (A, Hp)
    b = b_ref[...].astype(jnp.float32)           # (A, 1)

    # ---------------- Phase 1: fused logits matmul over `chunk` batch elements ----------------
    def emit_logits(start_b, nb):
        x_c = x_ref[pl.ds(start_b, nb)]          # (nb, Sp, Hp)
        x_flat = x_c.reshape(nb * Sp, Hp)        # free leading-dim merge (Sp multiple of 8)
        # logits[a, n] = sum_h w[a, h] * x_flat[n, h]  -> MXU matmul, no transposes.
        lg = jax.lax.dot_general(
            w, x_flat,
            dimension_numbers=(((1,), (1,)), ((), ())),
            preferred_element_type=jnp.float32,
        ) + b                                    # (A, nb*Sp), bias broadcast along lanes
        for j in range(nb):                      # static 128-aligned lane slices of the value
            logits_ref[start_b + j] = lg[:, j * Sp:(j + 1) * Sp]

    n_chunks, rem = divmod(Bb, chunk)

    def chunk_body(ci, carry):
        emit_logits(ci * chunk, chunk)
        return carry

    jax.lax.fori_loop(0, n_chunks, chunk_body, 0)
    if rem:                                      # static tail (chunk need not divide Bb)
        emit_logits(n_chunks * chunk, rem)

    # ---------------- Phase 2: per-batch softmax + attention-weighted sum ----------------
    need_mask = s_valid < Sp
    if need_mask:
        # Hoisted out of the loop (JAX does not CSE broadcasts).
        col = jax.lax.broadcasted_iota(jnp.int32, (A, Sp), 1)
        valid = col < s_valid                    # (A, Sp)

    def batch_body(bi, carry):
        lg = logits_ref[bi]                      # (A, Sp) f32
        atten_ref[bi] = lg.astype(atten_ref.dtype)
        if need_mask:
            lg = jnp.where(valid, lg, -jnp.inf)  # mask padded S columns before softmax
        m = jnp.max(lg, axis=-1, keepdims=True)
        e = jnp.exp(lg - m)
        denom = jnp.sum(e, axis=-1, keepdims=True)
        sm = e * pl.reciprocal(denom, approx=False)   # exact; cost hidden (HBM-bound kernel)
        xb = x_ref[bi]                           # (Sp, Hp); padded S rows are zero
        out = jnp.dot(sm.astype(xb.dtype), xb, preferred_element_type=jnp.float32)
        out_ref[bi] = out.astype(out_ref.dtype)
        return carry

    jax.lax.fori_loop(0, Bb, batch_body, 0, unroll=min(2, Bb))


@jax.jit
def multi_attention(inputs, weight, bias):
    """inputs: (B, S, H), weight: (A, H), bias: (A,) -> (out (B,A,H), atten (B,A,S))."""
    B, S, H = inputs.shape
    A = weight.shape[0]
    dt = inputs.dtype

    # Lane-dense padded extents (only where genuinely unaligned; A is never padded).
    Sp = _round_up(S, 128)
    Hp = _round_up(H, 128)

    x_p = inputs if (Sp, Hp) == (S, H) else jnp.pad(inputs, ((0, 0), (0, Sp - S), (0, Hp - H)))
    w_p = weight if Hp == H else jnp.pad(weight, ((0, 0), (0, Hp - H)))
    b_p = bias.reshape(A, 1).astype(jnp.float32)

    itemsize = jnp.dtype(dt).itemsize
    vmem_limit = _vmem_limit_bytes()
    Bb = _choose_block_batch(B, Sp, Hp, A, itemsize, vmem_limit)
    grid = (pl.cdiv(B, Bb),)

    # Phase-1 fusion width: keep the fused MXU operand <= ~512 KiB and <= 2048 result lanes.
    chunk = max(1, min(Bb, 2048 // Sp, (512 * 1024) // max(1, Sp * Hp * itemsize)))

    kernel = functools.partial(_multi_attention_kernel, s_valid=S, chunk=chunk)

    out_p, atten_p = pl.pallas_call(
        kernel,
        out_shape=(
            jax.ShapeDtypeStruct((B, A, Hp), dt),
            jax.ShapeDtypeStruct((B, A, Sp), dt),
        ),
        grid_spec=pltpu.PrefetchScalarGridSpec(
            num_scalar_prefetch=0,
            grid=grid,
            in_specs=[
                pl.BlockSpec((Bb, Sp, Hp), lambda i: (i, 0, 0)),  # Bb batches / step
                pl.BlockSpec((A, Hp), lambda i: (0, 0)),          # weight (grid-invariant)
                pl.BlockSpec((A, 1), lambda i: (0, 0)),           # bias   (grid-invariant)
            ],
            out_specs=[
                pl.BlockSpec((Bb, A, Hp), lambda i: (i, 0, 0)),
                pl.BlockSpec((Bb, A, Sp), lambda i: (i, 0, 0)),
            ],
            scratch_shapes=[pltpu.VMEM((Bb, A, Sp), jnp.float32)],
        ),
        compiler_params=pltpu.CompilerParams(
            dimension_semantics=("parallel",),
            vmem_limit_bytes=vmem_limit,
        ),
    )(x_p, w_p, b_p)

    out = out_p if Hp == H else out_p[:, :, :H]
    atten = atten_p if Sp == S else atten_p[:, :, :S]
    return out, atten


def init_params(key, atten_head_num, hidden_size, dtype=jnp.float32):
    """Deterministic init matching nn.Linear + xavier_uniform_ on the weight."""
    kw, kb = jax.random.split(key)
    limit_w = (6.0 / (hidden_size + atten_head_num)) ** 0.5
    weight = jax.random.uniform(
        kw, (atten_head_num, hidden_size), dtype=dtype, minval=-limit_w, maxval=limit_w
    )
    limit_b = 1.0 / (hidden_size ** 0.5)
    bias = jax.random.uniform(
        kb, (atten_head_num,), dtype=dtype, minval=-limit_b, maxval=limit_b
    )
    return weight, bias


def _reference(inputs, weight, bias):
    """Pure-JAX reference mirroring the PyTorch forward."""
    scores = jnp.einsum("bsh,ah->bsa", inputs, weight) + bias  # (B, S, A)
    atten = jnp.swapaxes(scores, 1, 2)                         # (B, A, S)
    atten_sm = jax.nn.softmax(atten, axis=-1)
    out = jnp.einsum("bas,bsh->bah", atten_sm, inputs)         # (B, A, H)
    return out, atten


if __name__ == "__main__":
    key = jax.random.PRNGKey(0)
    k_in, k_params = jax.random.split(key)

    B, S, H = 2, 8, 32       # batch, seq, hidden
    A = 4                    # atten_head_num

    inputs = jax.random.normal(k_in, (B, S, H), dtype=jnp.float32)
    weight, bias = init_params(k_params, A, H)

    out, atten = multi_attention(inputs, weight, bias)
    out = jax.block_until_ready(out)
    atten = jax.block_until_ready(atten)

    out_ref, atten_ref = _reference(inputs, weight, bias)
    assert out.shape == (B, A, H) and atten.shape == (B, A, S)
    assert jnp.allclose(atten, atten_ref, atol=1e-5, rtol=1e-5)
    assert jnp.allclose(out, out_ref, atol=1e-4, rtol=1e-4)

    print("KERNEL_OK")
</pallas_src>

<mosaic_0001>
module attributes {stable_mosaic.version = 11 : i64} {
  func.func @_multi_attention_kernel(%arg0: i32, %arg1: memref<2x128x128xf32, #tpu.memory_space<vmem>>, %arg2: memref<4x128xf32, #tpu.memory_space<vmem>>, %arg3: memref<4x1xf32, #tpu.memory_space<vmem>>, %arg4: memref<2x4x128xf32, #tpu.memory_space<vmem>>, %arg5: memref<2x4x128xf32, #tpu.memory_space<vmem>>, %arg6: memref<2x4x128xf32, #tpu.memory_space<vmem>>) attributes {dimension_semantics = [#tpu.dimension_semantics<parallel>], iteration_bounds = array<i64: 1>, scalar_prefetch = 0 : i64, scratch_operands = 1 : i64, tpu.core_type = #tpu.core_type<tc>, window_params = [{transform_indices = @transform_0, window_bounds = array<i64: 2, 128, 128>}, {pipeline_mode = #tpu.pipeline_mode<synchronous>, transform_indices = @transform_1, window_bounds = array<i64: 4, 128>}, {pipeline_mode = #tpu.pipeline_mode<synchronous>, transform_indices = @transform_2, window_bounds = array<i64: 4, 1>}, {transform_indices = @transform_3, window_bounds = array<i64: 2, 4, 128>}, {transform_indices = @transform_4, window_bounds = array<i64: 2, 4, 128>}]} {
    %c0 = arith.constant 0 : index
    %c0_0 = arith.constant 0 : index
    %0 = vector.load %arg2[%c0, %c0_0] : memref<4x128xf32, #tpu.memory_space<vmem>>, vector<4x128xf32>
    %c0_1 = arith.constant 0 : index
    %c0_2 = arith.constant 0 : index
    %1 = vector.load %arg3[%c0_1, %c0_2] : memref<4x1xf32, #tpu.memory_space<vmem>>, vector<4x1xf32>
    %c0_i32 = arith.constant 0 : i32
    %c2_i32 = arith.constant 2 : i32
    %2 = arith.muli %c0_i32, %c2_i32 : i32
    %3 = arith.index_cast %2 : i32 to index
    %c0_3 = arith.constant 0 : index
    %c0_4 = arith.constant 0 : index
    %4 = vector.load %arg1[%3, %c0_3, %c0_4] : memref<2x128x128xf32, #tpu.memory_space<vmem>>, vector<2x128x128xf32>
    %5 = vector.shape_cast %4 : vector<2x128x128xf32> to vector<256x128xf32>
    %cst = arith.constant dense<0.000000e+00> : vector<4x256xf32>
    %6 = tpu.matmul %0, %5, %cst {dimension_numbers = #tpu.dot_dimension_numbers<[1], [1], [0], [0], [0, 0, 1, 0], [], []>} : vector<4x128xf32>, vector<256x128xf32>, vector<4x256xf32> -> vector<4x256xf32>
    %7 = vector.broadcast %1 : vector<4x1xf32> to vector<4x256xf32>
    %8 = arith.addf %6, %7 : vector<4x256xf32>
    %9 = vector.extract_strided_slice %8 {offsets = [0, 0], sizes = [4, 128], strides = [1, 1]} : vector<4x256xf32> to vector<4x128xf32>
    %c0_i32_5 = arith.constant 0 : i32
    %10 = arith.addi %2, %c0_i32_5 : i32
    %11 = arith.index_cast %10 : i32 to index
    %c0_6 = arith.constant 0 : index
    %c0_7 = arith.constant 0 : index
    %12 = vector.load %arg6[%11, %c0_6, %c0_7] : memref<2x4x128xf32, #tpu.memory_space<vmem>>, vector<1x4x128xf32>
    %13 = vector.shape_cast %12 : vector<1x4x128xf32> to vector<4x128xf32>
    %14 = vector.shape_cast %9 : vector<4x128xf32> to vector<1x4x128xf32>
    tpu.vector_store %arg6[%11, %c0_6, %c0_7], %14 {strides = array<i32>} : memref<2x4x128xf32, #tpu.memory_space<vmem>>, vector<1x4x128xf32>,
    %15 = vector.extract_strided_slice %8 {offsets = [0, 128], sizes = [4, 128], strides = [1, 1]} : vector<4x256xf32> to vector<4x128xf32>
    %c1_i32 = arith.constant 1 : i32
    %16 = arith.addi %2, %c1_i32 : i32
    %17 = arith.index_cast %16 : i32 to index
    %c0_8 = arith.constant 0 : index
    %c0_9 = arith.constant 0 : index
    %18 = vector.load %arg6[%17, %c0_8, %c0_9] : memref<2x4x128xf32, #tpu.memory_space<vmem>>, vector<1x4x128xf32>
    %19 = vector.shape_cast %18 : vector<1x4x128xf32> to vector<4x128xf32>
    %20 = vector.shape_cast %15 : vector<4x128xf32> to vector<1x4x128xf32>
    tpu.vector_store %arg6[%17, %c0_8, %c0_9], %20 {strides = array<i32>} : memref<2x4x128xf32, #tpu.memory_space<vmem>>, vector<1x4x128xf32>,
    %c1_i32_10 = arith.constant 1 : i32
    %21 = tpu.iota {dimensions = array<i32: 1>} : vector<4x128xi32>
    %c8_i32 = arith.constant 8 : i32
    %22 = vector.broadcast %c8_i32 : i32 to vector<4x128xi32>
    %23 = arith.cmpi slt, %21, %22 : vector<4x128xi32>
    %c0_i32_11 = arith.constant 0 : i32
    %24 = arith.index_cast %c0_i32_11 : i32 to index
    %c0_12 = arith.constant 0 : index
    %c0_13 = arith.constant 0 : index
    %25 = vector.load %arg6[%24, %c0_12, %c0_13] : memref<2x4x128xf32, #tpu.memory_space<vmem>>, vector<1x4x128xf32>
    %26 = vector.shape_cast %25 : vector<1x4x128xf32> to vector<4x128xf32>
    %27 = arith.index_cast %c0_i32_11 : i32 to index
    %c0_14 = arith.constant 0 : index
    %c0_15 = arith.constant 0 : index
    %28 = vector.load %arg5[%27, %c0_14, %c0_15] : memref<2x4x128xf32, #tpu.memory_space<vmem>>, vector<1x4x128xf32>
    %29 = vector.shape_cast %28 : vector<1x4x128xf32> to vector<4x128xf32>
    %30 = vector.shape_cast %26 : vector<4x128xf32> to vector<1x4x128xf32>
    tpu.vector_store %arg5[%27, %c0_14, %c0_15], %30 {strides = array<i32>} : memref<2x4x128xf32, #tpu.memory_space<vmem>>, vector<1x4x128xf32>,
    %cst_16 = arith.constant 0xFF800000 : f32
    %31 = vector.broadcast %cst_16 : f32 to vector<4x128xf32>
    %32 = arith.select %23, %26, %31 : vector<4x128xi1>, vector<4x128xf32>
    %cst_17 = arith.constant dense<0xFF800000> : vector<4xf32>
    %33 = vector.multi_reduction <maximumf>, %32, %cst_17 [1] : vector<4x128xf32> to vector<4xf32>
    %34 = vector.shape_cast %33 : vector<4xf32> to vector<4x1xf32>
    %35 = vector.broadcast %34 : vector<4x1xf32> to vector<4x128xf32>
    %36 = arith.subf %32, %35 : vector<4x128xf32>
    %37 = math.exp %36 : vector<4x128xf32>
    %cst_18 = arith.constant dense<0.000000e+00> : vector<4xf32>
    %38 = vector.multi_reduction <add>, %37, %cst_18 [1] : vector<4x128xf32> to vector<4xf32>
    %39 = vector.shape_cast %38 : vector<4xf32> to vector<4x1xf32>
    %40 = tpu.reciprocal %39 : vector<4x1xf32> -> vector<4x1xf32>
    %41 = vector.broadcast %40 : vector<4x1xf32> to vector<4x128xf32>
    %42 = arith.mulf %37, %41 : vector<4x128xf32>
    %43 = arith.index_cast %c0_i32_11 : i32 to index
    %c0_19 = arith.constant 0 : index
    %c0_20 = arith.constant 0 : index
    %44 = vector.load %arg1[%43, %c0_19, %c0_20] : memref<2x128x128xf32, #tpu.memory_space<vmem>>, vector<1x128x128xf32>
    %45 = vector.shape_cast %44 : vector<1x128x128xf32> to vector<128x128xf32>
    %cst_21 = arith.constant dense<0.000000e+00> : vector<4x128xf32>
    %46 = tpu.matmul %42, %45, %cst_21 {dimension_numbers = #tpu.dot_dimension_numbers<[1], [0], [0], [1], [0, 0, 1, 1], [], []>} : vector<4x128xf32>, vector<128x128xf32>, vector<4x128xf32> -> vector<4x128xf32>
    %47 = arith.index_cast %c0_i32_11 : i32 to index
    %c0_22 = arith.constant 0 : index
    %c0_23 = arith.constant 0 : index
    %48 = vector.load %arg4[%47, %c0_22, %c0_23] : memref<2x4x128xf32, #tpu.memory_space<vmem>>, vector<1x4x128xf32>
    %49 = vector.shape_cast %48 : vector<1x4x128xf32> to vector<4x128xf32>
    %50 = vector.shape_cast %46 : vector<4x128xf32> to vector<1x4x128xf32>
    tpu.vector_store %arg4[%47, %c0_22, %c0_23], %50 {strides = array<i32>} : memref<2x4x128xf32, #tpu.memory_space<vmem>>, vector<1x4x128xf32>,
    %c1_i32_24 = arith.constant 1 : i32
    %51 = arith.index_cast %c1_i32_24 : i32 to index
    %c0_25 = arith.constant 0 : index
    %c0_26 = arith.constant 0 : index
    %52 = vector.load %arg6[%51, %c0_25, %c0_26] : memref<2x4x128xf32, #tpu.memory_space<vmem>>, vector<1x4x128xf32>
    %53 = vector.shape_cast %52 : vector<1x4x128xf32> to vector<4x128xf32>
    %54 = arith.index_cast %c1_i32_24 : i32 to index
    %c0_27 = arith.constant 0 : index
    %c0_28 = arith.constant 0 : index
    %55 = vector.load %arg5[%54, %c0_27, %c0_28] : memref<2x4x128xf32, #tpu.memory_space<vmem>>, vector<1x4x128xf32>
    %56 = vector.shape_cast %55 : vector<1x4x128xf32> to vector<4x128xf32>
    %57 = vector.shape_cast %53 : vector<4x128xf32> to vector<1x4x128xf32>
    tpu.vector_store %arg5[%54, %c0_27, %c0_28], %57 {strides = array<i32>} : memref<2x4x128xf32, #tpu.memory_space<vmem>>, vector<1x4x128xf32>,
    %cst_29 = arith.constant 0xFF800000 : f32
    %58 = vector.broadcast %cst_29 : f32 to vector<4x128xf32>
    %59 = arith.select %23, %53, %58 : vector<4x128xi1>, vector<4x128xf32>
    %cst_30 = arith.constant dense<0xFF800000> : vector<4xf32>
    %60 = vector.multi_reduction <maximumf>, %59, %cst_30 [1] : vector<4x128xf32> to vector<4xf32>
    %61 = vector.shape_cast %60 : vector<4xf32> to vector<4x1xf32>
    %62 = vector.broadcast %61 : vector<4x1xf32> to vector<4x128xf32>
    %63 = arith.subf %59, %62 : vector<4x128xf32>
    %64 = math.exp %63 : vector<4x128xf32>
    %cst_31 = arith.constant dense<0.000000e+00> : vector<4xf32>
    %65 = vector.multi_reduction <add>, %64, %cst_31 [1] : vector<4x128xf32> to vector<4xf32>
    %66 = vector.shape_cast %65 : vector<4xf32> to vector<4x1xf32>
    %67 = tpu.reciprocal %66 : vector<4x1xf32> -> vector<4x1xf32>
    %68 = vector.broadcast %67 : vector<4x1xf32> to vector<4x128xf32>
    %69 = arith.mulf %64, %68 : vector<4x128xf32>
    %70 = arith.index_cast %c1_i32_24 : i32 to index
    %c0_32 = arith.constant 0 : index
    %c0_33 = arith.constant 0 : index
    %71 = vector.load %arg1[%70, %c0_32, %c0_33] : memref<2x128x128xf32, #tpu.memory_space<vmem>>, vector<1x128x128xf32>
    %72 = vector.shape_cast %71 : vector<1x128x128xf32> to vector<128x128xf32>
    %cst_34 = arith.constant dense<0.000000e+00> : vector<4x128xf32>
    %73 = tpu.matmul %69, %72, %cst_34 {dimension_numbers = #tpu.dot_dimension_numbers<[1], [0], [0], [1], [0, 0, 1, 1], [], []>} : vector<4x128xf32>, vector<128x128xf32>, vector<4x128xf32> -> vector<4x128xf32>
    %74 = arith.index_cast %c1_i32_24 : i32 to index
    %c0_35 = arith.constant 0 : index
    %c0_36 = arith.constant 0 : index
    %75 = vector.load %arg4[%74, %c0_35, %c0_36] : memref<2x4x128xf32, #tpu.memory_space<vmem>>, vector<1x4x128xf32>
    %76 = vector.shape_cast %75 : vector<1x4x128xf32> to vector<4x128xf32>
    %77 = vector.shape_cast %73 : vector<4x128xf32> to vector<1x4x128xf32>
    tpu.vector_store %arg4[%74, %c0_35, %c0_36], %77 {strides = array<i32>} : memref<2x4x128xf32, #tpu.memory_space<vmem>>, vector<1x4x128xf32>,
    %c2_i32_37 = arith.constant 2 : i32
    return
  }
  func.func @transform_0(%arg0: i32) -> (i32, i32, i32) {
    %c0_i32 = arith.constant 0 : i32
    %c0_i32_0 = arith.constant 0 : i32
    %c0_i32_1 = arith.constant 0 : i32
    return %arg0, %c0_i32, %c0_i32_0 : i32, i32, i32
  }
  func.func @transform_1(%arg0: i32) -> (i32, i32) {
    %c0_i32 = arith.constant 0 : i32
    %c0_i32_0 = arith.constant 0 : i32
    %c0_i32_1 = arith.constant 0 : i32
    return %c0_i32, %c0_i32_0 : i32, i32
  }
  func.func @transform_2(%arg0: i32) -> (i32, i32) {
    %c0_i32 = arith.constant 0 : i32
    %c0_i32_0 = arith.constant 0 : i32
    %c0_i32_1 = arith.constant 0 : i32
    return %c0_i32, %c0_i32_0 : i32, i32
  }
  func.func @transform_3(%arg0: i32) -> (i32, i32, i32) {
    %c0_i32 = arith.constant 0 : i32
    %c0_i32_0 = arith.constant 0 : i32
    %c0_i32_1 = arith.constant 0 : i32
    return %arg0, %c0_i32, %c0_i32_0 : i32, i32, i32
  }
  func.func @transform_4(%arg0: i32) -> (i32, i32, i32) {
    %c0_i32 = arith.constant 0 : i32
    %c0_i32_0 = arith.constant 0 : i32
    %c0_i32_1 = arith.constant 0 : i32
    return %arg0, %c0_i32, %c0_i32_0 : i32, i32, i32
  }
}

</mosaic_0001>

<bundles_post_ra>
// kernel: multi_attention.1
= control target key start
LH: loop header
LB: loop body
LE: loop exit
PB: predicated region body
PF: predicated region fallthrough
CT: control target
= control target key end

     0   :  { %10 = vsyncpa [#allocation4], 0  ;;  %s495_s0 = inlined_call_operand.vmem [shape: f32[2,128,128], index: 0, kind: input, shape index: {}]   ;;  %s496_s1 = inlined_call_operand.vmem [shape: f32[4,128], index: 1, kind: input, shape index: {}]   ;;  %s497_s2 = inlined_call_operand.vmem [shape: f32[4,1], index: 2, kind: input, shape index: {}]   ;;  %s498_s3 = inlined_call_operand.hbm [shape: f32[2,4,128], index: 3, kind: output, shape index: {0}]   ;;  %s499_s4 = inlined_call_operand.hbm [shape: f32[2,4,128], index: 4, kind: output, shape index: {1}]  }
   0x1   :  { %v35_v0 = vld [vmem:[%s495_s0 + $0x78] sm:$0xff]  ;;  %v34_v2 = vld [vmem:[%s495_s0 + $0x70] sm:$0xff]  ;;  %v33_v4 = vld [vmem:[%s495_s0 + $0x68] sm:$0xff] }
   0x2   :  { %v51_v1 = vld [vmem:[%s495_s0 + $0xf8] sm:$0xff]  ;;  %57 = vmatpush.xpose.msra.mxu0 %v35_v0  ;;  %v50_v3 = vld [vmem:[%s495_s0 + $0xf0] sm:$0xff]  ;;  %147 = vmatpush.msra.mxu2 %v35_v0  ;;  %v49_v5 = vld [vmem:[%s495_s0 + $0xe8] sm:$0xff] }
   0x3   :  { %77 = vmatpush.xpose.msra.mxu1 %v51_v1  ;;  %213 = vmatpush.msra.mxu3 %v51_v1  ;;  %v32_v6 = vld [vmem:[%s495_s0 + $0x60] sm:$0xff] }
   0x4   :  { %148 = vmatpush.msra.mxu2 %v34_v2  ;;  %v48_v7 = vld [vmem:[%s495_s0 + $0xe0] sm:$0xff] }
   0x5   :  { %214 = vmatpush.msra.mxu3 %v50_v3 }
   0x6   :  { %58 = vmatpush.xpose.msra.mxu0 %v34_v2  ;;  %149 = vmatpush.msra.mxu2 %v33_v4 }
   0x7   :  { %78 = vmatpush.xpose.msra.mxu1 %v50_v3  ;;  %215 = vmatpush.msra.mxu3 %v49_v5 }
   0x8   :  { %11 = vsyncpa [#allocation6], 0  ;;  %150 = vmatpush.msra.mxu2 %v32_v6  ;;  %v31_v8 = vld [vmem:[%s495_s0 + $0x58] sm:$0xff]  ;;  %v30_v10 = vld [vmem:[%s495_s0 + $0x50] sm:$0xff]  ;;  %v353_v33 = vmov 0   ;;  %v100_v38 = vlaneseq  ;;  %vm106_vm1 = vcmask 1043456  }
   0x9   :  { %216 = vmatpush.msra.mxu3 %v48_v7  ;;  %v47_v9 = vld [vmem:[%s495_s0 + $0xd8] sm:$0xff]  ;;  %v46_v11 = vld [vmem:[%s495_s0 + $0xd0] sm:$0xff]  ;;  %v29_v12 = vld [vmem:[%s495_s0 + $0x48] sm:$0xff]  ;;  %292 = vset.pattern.permute.xlu0 %v353_v33  ;;  %s254_s6 = sshll.u32 %s499_s4, 4  ;;  %s355_s7 = smov 64   ;;  %s255_s6 = int_to_ptr.hbm [resolvable:$true] %s254_s6 }
   0xa   :  { %59 = vmatpush.xpose.msra.mxu0 %v33_v4  ;;  %151 = vmatpush.msra.mxu2 %v31_v8  ;;  %v45_v13 = vld [vmem:[%s495_s0 + $0xc8] sm:$0xff]  ;;  %v28_v14 = vld [vmem:[%s495_s0 + $0x40] sm:$0xff]  ;;  %v27_v16 = vld [vmem:[%s495_s0 + $0x38] sm:$0xff]  ;;  %v101_v41 = vand.u32 127, %v100_v38  ;;  %s356_s8 = smov 4   ;;  %s357_s9 = smov [#allocation3]  }
   0xb   :  { %79 = vmatpush.xpose.msra.mxu1 %v49_v5  ;;  %217 = vmatpush.msra.mxu3 %v47_v9  ;;  %v44_v15 = vld [vmem:[%s495_s0 + $0xc0] sm:$0xff]  ;;  %v43_v17 = vld [vmem:[%s495_s0 + $0xb8] sm:$0xff]  ;;  %v26_v18 = vld [vmem:[%s495_s0 + $0x30] sm:$0xff]  ;;  %s239_s10 = sshll.u32 %s357_s9, 4  ;;  %s241_s13 = sshll.u32 %s498_s3, 4  ;;  %s240_s10 = int_to_ptr.vmem [resolvable:$true] %s239_s10  ;;  %s242_s13 = int_to_ptr.hbm [resolvable:$true] %s241_s13 }
   0xc   :  { %152 = vmatpush.msra.mxu2 %v30_v10  ;;  %v42_v19 = vld [vmem:[%s495_s0 + $0xb0] sm:$0xff]  ;;  %v25_v20 = vld [vmem:[%s495_s0 + $0x28] sm:$0xff]  ;;  %v24_v22 = vld [vmem:[%s495_s0 + $0x20] sm:$0xff]  ;;  %vm102_vm0 = vcmp.lt.s32.totalorder %v101_v41, 8 }
   0xd   :  { %218 = vmatpush.msra.mxu3 %v46_v11  ;;  %v41_v21 = vld [vmem:[%s495_s0 + $0xa8] sm:$0xff]  ;;  %v40_v23 = vld [vmem:[%s495_s0 + $0xa0] sm:$0xff]  ;;  %v23_v24 = vld [vmem:[%s495_s0 + $0x18] sm:$0xff] }
   0xe   :  { %60 = vmatpush.xpose.msra.mxu0 %v32_v6  ;;  %153 = vmatpush.msra.mxu2 %v29_v12  ;;  %v39_v25 = vld [vmem:[%s495_s0 + $0x98] sm:$0xff]  ;;  %v22_v26 = vld [vmem:[%s495_s0 + $0x10] sm:$0xff]  ;;  %v21_v28 = vld [vmem:[%s495_s0 + $0x8] sm:$0xff] }
   0xf   :  { %80 = vmatpush.xpose.msra.mxu1 %v48_v7  ;;  %219 = vmatpush.msra.mxu3 %v45_v13  ;;  %v38_v27 = vld [vmem:[%s495_s0 + $0x90] sm:$0xff]  ;;  %v37_v29 = vld [vmem:[%s495_s0 + $0x88] sm:$0xff]  ;;  %v20_v30 = vld [vmem:[%s495_s0] sm:$0xff] }
  0x10   :  { %154 = vmatpush.msra.mxu2 %v28_v14  ;;  %v36_v31 = vld [vmem:[%s495_s0 + $0x80] sm:$0xff] }
  0x11   :  { %220 = vmatpush.msra.mxu3 %v44_v15  ;;  %v19_v32 = vld [vmem:[%s497_s2] sm:$0xf] }
  0x12   :  { %61 = vmatpush.xpose.msra.mxu0 %v31_v8  ;;  %155 = vmatpush.msra.mxu2 %v27_v16  ;;  %v18_v34 = vld [vmem:[%s496_s1] sm:$0xf]  ;;  %s354_s1 = smov [#allocation5]  }
  0x13   :  { %81 = vmatpush.xpose.msra.mxu1 %v47_v9  ;;  %221 = vmatpush.msra.mxu3 %v43_v17  ;;  %s252_s29 = sshll.u32 %s354_s1, 4  ;;  %s253_s29 = int_to_ptr.vmem [resolvable:$true] %s252_s29 }
  0x14   :  { %156 = vmatpush.msra.mxu2 %v26_v18  ;;  %54 = vperm.xlu0 %292, %v19_v32  }
  0x15   :  { %222 = vmatpush.msra.mxu3 %v42_v19 }
  0x16   :  { %62 = vmatpush.xpose.msra.mxu0 %v30_v10  ;;  %157 = vmatpush.msra.mxu2 %v25_v20 }
  0x17   :  { %82 = vmatpush.xpose.msra.mxu1 %v46_v11  ;;  %223 = vmatpush.msra.mxu3 %v41_v21 }
  0x18   :  { %158 = vmatpush.msra.mxu2 %v24_v22 }
  0x19   :  { %224 = vmatpush.msra.mxu3 %v40_v23 }
  0x1a   :  { %63 = vmatpush.xpose.msra.mxu0 %v29_v12  ;;  %159 = vmatpush.msra.mxu2 %v23_v24 }
  0x1b   :  { %83 = vmatpush.xpose.msra.mxu1 %v45_v13  ;;  %225 = vmatpush.msra.mxu3 %v39_v25 }
  0x1c   :  { %160 = vmatpush.msra.mxu2 %v22_v26 }
  0x1d   :  { %226 = vmatpush.msra.mxu3 %v38_v27 }
  0x1e   :  { %64 = vmatpush.xpose.msra.mxu0 %v28_v14  ;;  %161 = vmatpush.msra.mxu2 %v21_v28 }
  0x1f   :  { %84 = vmatpush.xpose.msra.mxu1 %v44_v15  ;;  %227 = vmatpush.msra.mxu3 %v37_v29 }
  0x20   :  { %162 = vmatpush.msra.mxu2 %v20_v30 }
  0x21   :  { %228 = vmatpush.msra.mxu3 %v36_v31 }
  0x22   :  { %65 = vmatpush.xpose.msra.mxu0 %v27_v16 }
  0x23   :  { %85 = vmatpush.xpose.msra.mxu1 %v43_v17 }
  0x26   :  { %66 = vmatpush.xpose.msra.mxu0 %v26_v18 }
  0x27   :  { %86 = vmatpush.xpose.msra.mxu1 %v42_v19 }
  0x2a   :  { %67 = vmatpush.xpose.msra.mxu0 %v25_v20 }
  0x2b   :  { %87 = vmatpush.xpose.msra.mxu1 %v41_v21 }
  0x2e   :  { %68 = vmatpush.xpose.msra.mxu0 %v24_v22 }
  0x2f   :  { %88 = vmatpush.xpose.msra.mxu1 %v40_v23 }
  0x32   :  { %69 = vmatpush.xpose.msra.mxu0 %v23_v24 }
  0x33   :  { %89 = vmatpush.xpose.msra.mxu1 %v39_v25 }
  0x36   :  { %70 = vmatpush.xpose.msra.mxu0 %v22_v26 }
  0x37   :  { %90 = vmatpush.xpose.msra.mxu1 %v38_v27 }
  0x3a   :  { %71 = vmatpush.xpose.msra.mxu0 %v21_v28 }
  0x3b   :  { %91 = vmatpush.xpose.msra.mxu1 %v37_v29 }
  0x3e   :  { %72 = vmatpush.xpose.msra.mxu0 %v20_v30 }
  0x3f   :  { %92 = vmatpush.xpose.msra.mxu1 %v36_v31 }
  0x41   :  { %73 = vmatmul.f32.vlgmr.msra.gmra.mxu0 %v18_v34 }
  0x42   :  { %93 = vmatmul.f32.vlgmr.msra.gmra.mxu1 %v18_v34 }
  0x86   :  { %v55_v35 = vpop.permute.xlu0 %54 }
  0xbe   :  { %v74_v36 = vpop.f32.mrf.mxu0 }
  0xbf   :  { %v94_v37 = vpop.f32.mrf.mxu1  ;;  %v75_v39 = vadd.f32 %v74_v36, %v55_v35 }
  0xc0   :  { %v95_v40 = vadd.f32 %v94_v37, %v55_v35 }
  0xc1   :  { %97 = vst [vmem:[#allocation2] sm:$0xf] %v75_v39 }
  0xc2   :  { %99 = vst [vmem:[#allocation2 + $0x4] sm:$0xf] %v95_v40 }
  0xc8   :  { %v103_v42 = vld [vmem:[#allocation2] sm:$0xf] }
  0xc9   :  { %v168_v43 = vld [vmem:[#allocation2 + $0x4] sm:$0xf]  ;;  %v105_v44 = vsel %vm102_vm0, %v103_v42, -inf  ;;  %104 = vst [vmem:[#allocation5] sm:$0xf] %v103_v42 }
  0xca   :  { %v171_v45 = vsel %vm102_vm0, %v168_v43, -inf  ;;  %170 = vst [vmem:[#allocation5 + $0x4] sm:$0xf] %v168_v43  ;;  %v107_v46 = vsel %vm106_vm1, %v105_v44, -inf }
  0xcb   :  { %v172_v47 = vsel %vm106_vm1, %v171_v45, -inf  ;;  %108 = vmax.xlane.f32.xlu0 %v107_v46  ;;  %260 = dma.vmem_to_hbm [thread:$0]  %s253_s29, 128, %s255_s6, [#allocation6], %s355_s7, %s355_s7, %s356_s8  }
  0xcc   :  { %173 = vmax.xlane.f32.xlu1 %v172_v47 }
 0x13e   :  { %v109_v48 = vpop.xlane.xlu0 %108 }
 0x13f   :  { %v174_v49 = vpop.xlane.xlu1 %173  ;;  %v110_v50 = vsub.f32 %v105_v44, %v109_v48 }
 0x140   :  { %v175_v51 = vsub.f32 %v171_v45, %v174_v49 }
 0x141   :  { %v111_v52 = vmul.f32 1.442695, %v110_v50 }
 0x142   :  { %v176_v53 = vmul.f32 1.442695, %v175_v51 }
 0x143   :  { %293 = vpow2.f32 %v111_v52 }
 0x144   :  { %295 = vpow2.f32 %v176_v53 }
 0x149   :  { %v294_v54 = vpop.eup %293 }
 0x14a   :  { %v296_v55 = vpop.eup %295  ;;  %v113_v56 = vsel %vm106_vm1, %v294_v54, 0.0 }
 0x14b   :  { %v178_v57 = vsel %vm106_vm1, %v296_v55, 0.0  ;;  %114 = vadd.xlane.f32.xlu1 %v113_v56 }
 0x14c   :  { %179 = vadd.xlane.f32.xlu2 %v178_v57 }
 0x1be   :  { %v115_v58 = vpop.xlane.xlu1 %114 }
 0x1bf   :  { %v180_v59 = vpop.xlane.xlu2 %179  ;;  %297 = vrcp.f32 %v115_v58  ;;  %v127_v2 = vand.u32 2147483648, %v115_v58  ;;  %v125_v5 = vand.u32 2147483647, %v115_v58  ;;  %vm121_vm4 = vweird.f32 %v115_v58 }
 0x1c0   :  { %299 = vrcp.f32 %v180_v59  ;;  %v192_v3 = vand.u32 2147483648, %v180_v59  ;;  %v190_v7 = vand.u32 2147483647, %v180_v59  ;;  %vm186_vm5 = vweird.f32 %v180_v59 }
 0x1c1   :  { %v128_v9 = vor.u32 1.1754944e-38, %v127_v2  ;;  %vm126_vm8 = vcmp.eq.f32.partialorder %v125_v5, 8.507059e+37 }
 0x1c2   :  { %v193_v11 = vor.u32 1.1754944e-38, %v192_v3  ;;  %vm191_vm9 = vcmp.eq.f32.partialorder %v190_v7, 8.507059e+37 }
 0x1c5   :  { %v298_v60 = vpop.eup %297 }
 0x1c6   :  { %v300_v61 = vpop.eup %299  ;;  %v117_v62 = vmul.f32 %v298_v60, %v115_v58  ;;  %vm122_vm2 = vweird.f32 %v298_v60 }
 0x1c7   :  { %v182_v63 = vmul.f32 %v300_v61, %v180_v59  ;;  %vm187_vm3 = vweird.f32 %v300_v61  ;;  %vm123_vm6 = vmor %vm121_vm4, %vm122_vm2 }
 0x1c8   :  { %v118_v0 = vsub.f32 1.0, %v117_v62  ;;  %vm188_vm7 = vmor %vm186_vm5, %vm187_vm3 }
 0x1c9   :  { %v183_v1 = vsub.f32 1.0, %v182_v63 }
 0x1ca   :  { %v119_v4 = vmul.f32 %v298_v60, %v118_v0 }
 0x1cb   :  { %v184_v6 = vmul.f32 %v300_v61, %v183_v1 }
 0x1cc   :  { %v120_v8 = vadd.f32 %v298_v60, %v119_v4 }
 0x1cd   :  { %v185_v10 = vadd.f32 %v300_v61, %v184_v6 }
 0x1ce   :  { %v124_v12 = vsel %vm123_vm6, %v298_v60, %v120_v8 }
 0x1cf   :  { %v129_v13 = vsel %vm126_vm8, %v128_v9, %v124_v12  ;;  %v189_v14 = vsel %vm188_vm7, %v300_v61, %v185_v10 }
 0x1d0   :  { %v130_v15 = vmul.f32 %v294_v54, %v129_v13  ;;  %v194_v16 = vsel %vm191_vm9, %v193_v11, %v189_v14 }
 0x1d1   :  { %v195_v17 = vmul.f32 %v296_v55, %v194_v16 }
 0x1d2   :  { %163 = vmatmul.f32.vlgmr.msra.gmra.mxu2 %v130_v15 }
 0x1d3   :  { %229 = vmatmul.f32.vlgmr.msra.gmra.mxu3 %v195_v17 }
 0x255   :  { %v164_v18 = vpop.f32.mrf.mxu2 }
 0x256   :  { %167 = vst [vmem:[#allocation3] sm:$0xf] %v164_v18  ;;  %v230_v19 = vpop.f32.mrf.mxu3 }
 0x257   :  { %234 = vst [vmem:[#allocation3 + $0x4] sm:$0xf] %v230_v19 }
 0x258   :  { %247 = dma.vmem_to_hbm [thread:$0]  %s240_s10, 128, %s242_s13, [#allocation4], %s355_s7, %s355_s7, %s356_s8  }
 0x259   :  { %349 = dma.done.wait [#allocation4], 128  }
 0x25a   :  { %350 = vsyncadd [#allocation4], 4294967168 }
 0x25b   :  { %351 = dma.done.wait [#allocation6], 128  }
 0x25c   :  { %352 = vsyncadd [#allocation6], 4294967168 }
 0x25d   :  { %269 = vsyncpa [#allocation4], 1 }
 0x25e   :  { %270 = vsyncpa [#allocation6], 1 }

</bundles_post_ra>
